<compile_context>
chip_gen: v6e
topology: v6e:2x2x1
jax: 0.10.0
libtpu: 0.0.40
codegen_flags: <defaults>
</compile_context>

<pallas_src>
import jax
import jax.numpy as jnp
from jax.experimental import pallas as pl
from jax.experimental.pallas import tpu as pltpu

HIDDEN = 128   # tianshou Net hidden width (fixed at 128)


def _round_up(x, m):
    return (x + m - 1) // m * m


def _cdiv(a, b):
    return (a + b - 1) // b


def _choose_batch_tile(B, block_b):
    """Pick (TB, nblocks): TB multiple of 8 sublanes; grid has an even number of
    (>=2) blocks whenever B is big enough so ('parallel',) shards over both v7x
    TensorCores.  The grid may be ragged (last block partially full)."""
    nblocks = max(1, _cdiv(B, block_b))
    if nblocks == 1 and B > 8:
        nblocks = 2                       # medium B: split so both TCs get work
    elif nblocks > 2 and nblocks % 2 == 1:
        nblocks += 1                      # keep the 2-core split balanced
    tb = _round_up(_cdiv(B, nblocks), 8)
    nblocks = _cdiv(B, tb)                # re-derive after sublane rounding
    return tb, nblocks


def actor_kernel(x_ref, w0_ref, b0_ref, w1_ref, b1_ref, w2_ref, b2_ref, out_ref):
    n_actions = out_ref.shape[-1]
    # f32 observations cast to bf16 in-kernel (VALU has slack); avoids a
    # separate wrapper-side cast pass over x in HBM.
    x = x_ref[...].astype(jnp.bfloat16)

    # --- preprocess MLP: Linear -> ReLU -> Linear -> ReLU (bf16 MXU, f32 accumulate) ---
    h = jnp.dot(x, w0_ref[...], preferred_element_type=jnp.float32) + b0_ref[...]
    h = jnp.maximum(h, 0.0).astype(jnp.bfloat16)
    h = jnp.dot(h, w1_ref[...], preferred_element_type=jnp.float32) + b1_ref[...]
    h = jnp.maximum(h, 0.0).astype(jnp.bfloat16)

    # --- Actor.last (+ zero-padded columns for a lane-dense MXU shape) ---
    logits = jnp.dot(h, w2_ref[...], preferred_element_type=jnp.float32) + b2_ref[...]

    # --- softmax over the A real action columns only; store narrow bf16 ---
    lg = logits[:, :n_actions]
    m = jnp.max(lg, axis=-1, keepdims=True)
    e = jnp.exp(lg - m)
    denom = jnp.sum(e, axis=-1, keepdims=True)
    out_ref[...] = (e * pl.reciprocal(denom, approx=False)).astype(out_ref.dtype)


def actor_forward(x, params, state=None, block_b=2048):
    """x: [B, D] float32 flattened observation. Returns (probs [B, A] bf16, state)."""
    w0, b0, w1, b1, w2, b2, n_actions = params
    B, D = x.shape
    a_pad = w2.shape[1]
    tb, nblocks = _choose_batch_tile(B, block_b)

    flops = 2 * B * (D * HIDDEN + HIDDEN * HIDDEN + HIDDEN * a_pad)
    bytes_accessed = (
        x.size * x.dtype.itemsize                    # f32 activations in
        + (w0.size + w1.size + w2.size) * 2          # bf16 weights (resident)
        + (b0.size + b1.size + b2.size) * 4          # f32 biases
        + B * n_actions * 2                          # bf16 probs out (narrow)
    )

    probs = pl.pallas_call(
        actor_kernel,
        out_shape=jax.ShapeDtypeStruct((B, n_actions), jnp.bfloat16),
        grid=(nblocks,),
        in_specs=[
            pl.BlockSpec((tb, D), lambda i: (i, 0)),          # x: streamed over batch
            pl.BlockSpec((D, HIDDEN), lambda i: (0, 0)),      # weights: VMEM-resident
            pl.BlockSpec((1, HIDDEN), lambda i: (0, 0)),
            pl.BlockSpec((HIDDEN, HIDDEN), lambda i: (0, 0)),
            pl.BlockSpec((1, HIDDEN), lambda i: (0, 0)),
            pl.BlockSpec((HIDDEN, a_pad), lambda i: (0, 0)),
            pl.BlockSpec((1, a_pad), lambda i: (0, 0)),
        ],
        out_specs=pl.BlockSpec((tb, n_actions), lambda i: (i, 0)),
        compiler_params=pltpu.CompilerParams(
            dimension_semantics=("parallel",),     # batch blocks -> both TCs on v7x
            vmem_limit_bytes=32 << 20,
        ),
        cost_estimate=pl.CostEstimate(
            flops=flops,
            transcendentals=B * n_actions,
            bytes_accessed=bytes_accessed,
        ),
    )(x, w0, b0, w1, b1, w2, b2)

    # hidden state is passed through untouched (as in tianshou's Net.forward)
    return probs, state


def init_params(key, in_dim, hidden, n_actions):
    """Deterministic synthetic parameters (PyTorch-Linear-like uniform init), f32, (in,out) layout."""
    ks = jax.random.split(key, 6)

    def lin(kw, kb, fan_in, fan_out):
        bound = 1.0 / jnp.sqrt(jnp.float32(fan_in))
        w = jax.random.uniform(kw, (fan_in, fan_out), jnp.float32, -bound, bound)
        b = jax.random.uniform(kb, (1, fan_out), jnp.float32, -bound, bound)
        return w, b

    w0, b0 = lin(ks[0], ks[1], in_dim, hidden)
    w1, b1 = lin(ks[2], ks[3], hidden, hidden)
    w2, b2 = lin(ks[4], ks[5], hidden, n_actions)
    return (w0, b0, w1, b1, w2, b2)


def prepare_params(raw_params):
    """Cast matmul weights to bf16; zero-pad the action head to a lane-dense width (done once)."""
    w0, b0, w1, b1, w2, b2 = raw_params
    n_actions = w2.shape[1]
    a_pad = _round_up(n_actions, 128)
    w2p = jnp.zeros((w2.shape[0], a_pad), jnp.float32).at[:, :n_actions].set(w2)
    b2p = jnp.zeros((1, a_pad), jnp.float32).at[:, :n_actions].set(b2)
    return (
        w0.astype(jnp.bfloat16), b0.astype(jnp.float32),
        w1.astype(jnp.bfloat16), b1.astype(jnp.float32),
        w2p.astype(jnp.bfloat16), b2p.astype(jnp.float32),
        n_actions,
    )


def actor_reference(x, raw_params):
    """Pure-JAX f32 reference of the PyTorch forward."""
    w0, b0, w1, b1, w2, b2 = raw_params
    h = jnp.maximum(x @ w0 + b0, 0.0)
    h = jnp.maximum(h @ w1 + b1, 0.0)
    return jax.nn.softmax(h @ w2 + b2, axis=-1)


if __name__ == "__main__":
    key = jax.random.PRNGKey(0)
    k_obs, k_par = jax.random.split(key)

    B = 8               # batch
    obs_shape = (4, 4)  # small observation, flattened to D=16 by the preprocess net
    D = 16
    H = 128             # tianshou Net hidden width (fixed at 128)
    A = 8               # np.prod(action_shape)

    s = jax.random.normal(k_obs, (B,) + obs_shape, jnp.float32)
    x = s.reshape(B, -1)  # flatten(1), as done in tianshou's Net.forward

    raw_params = init_params(k_par, D, H, A)
    params = prepare_params(raw_params)

    probs, h = actor_forward(x, params, state=None)
    probs = jax.block_until_ready(probs)

    # sanity: shape/dtype, finite, rows of a softmax sum to ~1 (exact reciprocal,
    # only bf16 output rounding), and agreement with the f32 pure-JAX reference
    # within bf16-pipeline tolerance.
    assert probs.shape == (B, A)
    p32 = probs.astype(jnp.float32)
    assert bool(jnp.all(jnp.isfinite(p32)))
    assert jnp.allclose(jnp.sum(p32, axis=-1), 1.0, atol=1e-2)
    ref = actor_reference(x, raw_params)
    assert jnp.allclose(p32, ref, atol=3e-2)

    print("KERNEL_OK")
</pallas_src>

<mosaic_0001>
module attributes {stable_mosaic.version = 11 : i64} {
  func.func @actor_kernel(%arg0: i32, %arg1: memref<8x16xf32, #tpu.memory_space<vmem>>, %arg2: memref<16x128xbf16, #tpu.memory_space<vmem>>, %arg3: memref<1x128xf32, #tpu.memory_space<vmem>>, %arg4: memref<128x128xbf16, #tpu.memory_space<vmem>>, %arg5: memref<1x128xf32, #tpu.memory_space<vmem>>, %arg6: memref<128x128xbf16, #tpu.memory_space<vmem>>, %arg7: memref<1x128xf32, #tpu.memory_space<vmem>>, %arg8: memref<8x8xbf16, #tpu.memory_space<vmem>>) attributes {dimension_semantics = [#tpu.dimension_semantics<parallel>], iteration_bounds = array<i64: 1>, scalar_prefetch = 0 : i64, scratch_operands = 0 : i64, tpu.core_type = #tpu.core_type<tc>, window_params = [{transform_indices = @transform_0, window_bounds = array<i64: 8, 16>}, {pipeline_mode = #tpu.pipeline_mode<synchronous>, transform_indices = @transform_1, window_bounds = array<i64: 16, 128>}, {pipeline_mode = #tpu.pipeline_mode<synchronous>, transform_indices = @transform_2, window_bounds = array<i64: 1, 128>}, {pipeline_mode = #tpu.pipeline_mode<synchronous>, transform_indices = @transform_3, window_bounds = array<i64: 128, 128>}, {pipeline_mode = #tpu.pipeline_mode<synchronous>, transform_indices = @transform_4, window_bounds = array<i64: 1, 128>}, {pipeline_mode = #tpu.pipeline_mode<synchronous>, transform_indices = @transform_5, window_bounds = array<i64: 128, 128>}, {pipeline_mode = #tpu.pipeline_mode<synchronous>, transform_indices = @transform_6, window_bounds = array<i64: 1, 128>}, {transform_indices = @transform_7, window_bounds = array<i64: 8, 8>}]} {
    %c0 = arith.constant 0 : index
    %c0_0 = arith.constant 0 : index
    %0 = vector.load %arg1[%c0, %c0_0] : memref<8x16xf32, #tpu.memory_space<vmem>>, vector<8x16xf32>
    %1 = arith.truncf %0 : vector<8x16xf32> to vector<8x16xbf16>
    %c0_1 = arith.constant 0 : index
    %c0_2 = arith.constant 0 : index
    %2 = vector.load %arg2[%c0_1, %c0_2] : memref<16x128xbf16, #tpu.memory_space<vmem>>, vector<16x128xbf16>
    %cst = arith.constant dense<0.000000e+00> : vector<8x128xf32>
    %3 = tpu.matmul %1, %2, %cst {dimension_numbers = #tpu.dot_dimension_numbers<[1], [0], [0], [1], [0, 0, 1, 1], [], []>} : vector<8x16xbf16>, vector<16x128xbf16>, vector<8x128xf32> -> vector<8x128xf32>
    %c0_3 = arith.constant 0 : index
    %c0_4 = arith.constant 0 : index
    %4 = vector.load %arg3[%c0_3, %c0_4] : memref<1x128xf32, #tpu.memory_space<vmem>>, vector<1x128xf32>
    %5 = vector.broadcast %4 : vector<1x128xf32> to vector<8x128xf32>
    %6 = arith.addf %3, %5 : vector<8x128xf32>
    %cst_5 = arith.constant 0.000000e+00 : f32
    %7 = vector.broadcast %cst_5 : f32 to vector<8x128xf32>
    %8 = arith.maximumf %6, %7 : vector<8x128xf32>
    %9 = arith.truncf %8 : vector<8x128xf32> to vector<8x128xbf16>
    %c0_6 = arith.constant 0 : index
    %c0_7 = arith.constant 0 : index
    %10 = vector.load %arg4[%c0_6, %c0_7] : memref<128x128xbf16, #tpu.memory_space<vmem>>, vector<128x128xbf16>
    %cst_8 = arith.constant dense<0.000000e+00> : vector<8x128xf32>
    %11 = tpu.matmul %9, %10, %cst_8 {dimension_numbers = #tpu.dot_dimension_numbers<[1], [0], [0], [1], [0, 0, 1, 1], [], []>} : vector<8x128xbf16>, vector<128x128xbf16>, vector<8x128xf32> -> vector<8x128xf32>
    %c0_9 = arith.constant 0 : index
    %c0_10 = arith.constant 0 : index
    %12 = vector.load %arg5[%c0_9, %c0_10] : memref<1x128xf32, #tpu.memory_space<vmem>>, vector<1x128xf32>
    %13 = vector.broadcast %12 : vector<1x128xf32> to vector<8x128xf32>
    %14 = arith.addf %11, %13 : vector<8x128xf32>
    %cst_11 = arith.constant 0.000000e+00 : f32
    %15 = vector.broadcast %cst_11 : f32 to vector<8x128xf32>
    %16 = arith.maximumf %14, %15 : vector<8x128xf32>
    %17 = arith.truncf %16 : vector<8x128xf32> to vector<8x128xbf16>
    %c0_12 = arith.constant 0 : index
    %c0_13 = arith.constant 0 : index
    %18 = vector.load %arg6[%c0_12, %c0_13] : memref<128x128xbf16, #tpu.memory_space<vmem>>, vector<128x128xbf16>
    %cst_14 = arith.constant dense<0.000000e+00> : vector<8x128xf32>
    %19 = tpu.matmul %17, %18, %cst_14 {dimension_numbers = #tpu.dot_dimension_numbers<[1], [0], [0], [1], [0, 0, 1, 1], [], []>} : vector<8x128xbf16>, vector<128x128xbf16>, vector<8x128xf32> -> vector<8x128xf32>
    %c0_15 = arith.constant 0 : index
    %c0_16 = arith.constant 0 : index
    %20 = vector.load %arg7[%c0_15, %c0_16] : memref<1x128xf32, #tpu.memory_space<vmem>>, vector<1x128xf32>
    %21 = vector.broadcast %20 : vector<1x128xf32> to vector<8x128xf32>
    %22 = arith.addf %19, %21 : vector<8x128xf32>
    %23 = vector.extract_strided_slice %22 {offsets = [0, 0], sizes = [8, 8], strides = [1, 1]} : vector<8x128xf32> to vector<8x8xf32>
    %cst_17 = arith.constant dense<0xFF800000> : vector<8xf32>
    %24 = vector.multi_reduction <maximumf>, %23, %cst_17 [1] : vector<8x8xf32> to vector<8xf32>
    %25 = vector.shape_cast %24 : vector<8xf32> to vector<8x1xf32>
    %26 = vector.broadcast %25 : vector<8x1xf32> to vector<8x8xf32>
    %27 = arith.subf %23, %26 : vector<8x8xf32>
    %28 = math.exp %27 : vector<8x8xf32>
    %cst_18 = arith.constant dense<0.000000e+00> : vector<8xf32>
    %29 = vector.multi_reduction <add>, %28, %cst_18 [1] : vector<8x8xf32> to vector<8xf32>
    %30 = vector.shape_cast %29 : vector<8xf32> to vector<8x1xf32>
    %31 = tpu.reciprocal %30 : vector<8x1xf32> -> vector<8x1xf32>
    %32 = vector.broadcast %31 : vector<8x1xf32> to vector<8x8xf32>
    %33 = arith.mulf %28, %32 : vector<8x8xf32>
    %34 = arith.truncf %33 : vector<8x8xf32> to vector<8x8xbf16>
    %c0_19 = arith.constant 0 : index
    %c0_20 = arith.constant 0 : index
    %35 = vector.load %arg8[%c0_19, %c0_20] : memref<8x8xbf16, #tpu.memory_space<vmem>>, vector<8x8xbf16>
    tpu.vector_store %arg8[%c0_19, %c0_20], %34 {strides = array<i32>} : memref<8x8xbf16, #tpu.memory_space<vmem>>, vector<8x8xbf16>,
    return
  }
  func.func @transform_0(%arg0: i32) -> (i32, i32) {
    %c0_i32 = arith.constant 0 : i32
    %c0_i32_0 = arith.constant 0 : i32
    return %arg0, %c0_i32 : i32, i32
  }
  func.func @transform_1(%arg0: i32) -> (i32, i32) {
    %c0_i32 = arith.constant 0 : i32
    %c0_i32_0 = arith.constant 0 : i32
    %c0_i32_1 = arith.constant 0 : i32
    return %c0_i32, %c0_i32_0 : i32, i32
  }
  func.func @transform_2(%arg0: i32) -> (i32, i32) {
    %c0_i32 = arith.constant 0 : i32
    %c0_i32_0 = arith.constant 0 : i32
    %c0_i32_1 = arith.constant 0 : i32
    return %c0_i32, %c0_i32_0 : i32, i32
  }
  func.func @transform_3(%arg0: i32) -> (i32, i32) {
    %c0_i32 = arith.constant 0 : i32
    %c0_i32_0 = arith.constant 0 : i32
    %c0_i32_1 = arith.constant 0 : i32
    return %c0_i32, %c0_i32_0 : i32, i32
  }
  func.func @transform_4(%arg0: i32) -> (i32, i32) {
    %c0_i32 = arith.constant 0 : i32
    %c0_i32_0 = arith.constant 0 : i32
    %c0_i32_1 = arith.constant 0 : i32
    return %c0_i32, %c0_i32_0 : i32, i32
  }
  func.func @transform_5(%arg0: i32) -> (i32, i32) {
    %c0_i32 = arith.constant 0 : i32
    %c0_i32_0 = arith.constant 0 : i32
    %c0_i32_1 = arith.constant 0 : i32
    return %c0_i32, %c0_i32_0 : i32, i32
  }
  func.func @transform_6(%arg0: i32) -> (i32, i32) {
    %c0_i32 = arith.constant 0 : i32
    %c0_i32_0 = arith.constant 0 : i32
    %c0_i32_1 = arith.constant 0 : i32
    return %c0_i32, %c0_i32_0 : i32, i32
  }
  func.func @transform_7(%arg0: i32) -> (i32, i32) {
    %c0_i32 = arith.constant 0 : i32
    %c0_i32_0 = arith.constant 0 : i32
    return %arg0, %c0_i32 : i32, i32
  }
}

</mosaic_0001>

<bundles_post_ra>
// kernel: tpu_custom_call.1
= control target key start
LH: loop header
LB: loop body
LE: loop exit
PB: predicated region body
PF: predicated region fallthrough
CT: control target
= control target key end

     0   :  { %12 = vsyncpa [#allocation3], 0  ;;  %s727_s0 = inlined_call_operand.hbm [shape: f32[8,16], index: 0, kind: input, shape index: {}]   ;;  %s728_s1 = inlined_call_operand.hbm [shape: bf16[16,128], index: 1, kind: input, shape index: {}]   ;;  %s729_s2 = inlined_call_operand.vmem [shape: f32[1,128], index: 2, kind: input, shape index: {}]   ;;  %s730_s3 = inlined_call_operand.hbm [shape: bf16[128,128], index: 3, kind: input, shape index: {}]   ;;  %s731_s4 = inlined_call_operand.vmem [shape: f32[1,128], index: 4, kind: input, shape index: {}]   ;;  %s732_s5 = inlined_call_operand.hbm [shape: bf16[128,128], index: 5, kind: input, shape index: {}]   ;;  %s733_s6 = inlined_call_operand.vmem [shape: f32[1,128], index: 6, kind: input, shape index: {}]   ;;  %s734_s7 = inlined_call_operand.hbm [shape: bf16[8,8], index: 7, kind: output, shape index: {}]  }
   0x1   :  { %13 = vsyncpa [#allocation6], 0 }
   0x2   :  { %14 = vsyncpa [#allocation9], 0 }
   0x3   :  { %15 = vsyncpa [#allocation4], 0  ;;  %s625_s24 = smov [#allocation5]  }
   0x4   :  { %s31_s25 = sshll.u32 %s625_s24, 4  ;;  %s32_s25 = int_to_ptr.vmem [resolvable:$true] %s31_s25 }
   0x5   :  { %s525_s26 = scalar_lea.vmem %s32_s25, 128  ;;  %p530_p1 = scmp.lt.s32.totalorder %s32_s25, %s32_s25 }
   0x6   :  { %p526_p0 = scmp.ne.s32.totalorder %s32_s25, %s525_s26  ;;  %p531_p2 = scmp.lt.s32.totalorder %s525_s26, %s525_s26 }
   0x8   :  { %p532_p3 = por %p531_p2, %p530_p1 }
   0xa   :  { %p533_p4 = pnand %p532_p3, %p526_p0 }
   0xc   :  { %536 = shalt.err (!%p533_p4)
}
   0xd   :  { %s626_s27 = smov 64   ;;  %s627_s28 = smov 4  }
   0xe   :  { %37 = dma.hbm_to_vmem [thread:$0]  %s728_s1, 128, %s32_s25, [#allocation6], %s626_s27, %s626_s27, %s627_s28  }
   0xf   :  { %s628_s8 = smov [#allocation2]   ;;  %s629_s10 = smov [#allocation7]  }
  0x10   :  { %s22_s9 = sshll.u32 %s628_s8, 4  ;;  %s45_s11 = sshll.u32 %s629_s10, 4  ;;  %s23_s9 = int_to_ptr.vmem [resolvable:$true] %s22_s9  ;;  %s46_s11 = int_to_ptr.vmem [resolvable:$true] %s45_s11 }
  0x11   :  { %s545_s12 = scalar_lea.vmem %s23_s9, 128  ;;  %p550_p6 = scmp.lt.s32.totalorder %s23_s9, %s23_s9 }
  0x12   :  { %p546_p5 = scmp.ne.s32.totalorder %s23_s9, %s545_s12  ;;  %p551_p7 = scmp.lt.s32.totalorder %s545_s12, %s545_s12 }
  0x14   :  { %p552_p8 = por %p551_p7, %p550_p6 }
  0x16   :  { %p553_p9 = pnand %p552_p8, %p546_p5 }
  0x18   :  { %556 = shalt.err (!%p553_p9)
}
  0x19   :  { %25 = dma.hbm_to_vmem [thread:$0]  %s727_s0, 128, %s23_s9, [#allocation3]  }
  0x1a   :  { %s565_s15 = scalar_lea.vmem %s46_s11, 1024  ;;  %p570_p11 = scmp.lt.s32.totalorder %s46_s11, %s46_s11 }
  0x1b   :  { %p566_p10 = scmp.ne.s32.totalorder %s46_s11, %s565_s15  ;;  %p571_p12 = scmp.lt.s32.totalorder %s565_s15, %s565_s15 }
  0x1d   :  { %p572_p13 = por %p571_p12, %p570_p11 }
  0x1f   :  { %p573_p0 = pnand %p572_p13, %p566_p10 }
  0x21   :  { %576 = shalt.err (!%p573_p0)
}
  0x22   :  { %51 = dma.hbm_to_vmem [thread:$0]  %s730_s3, 1024, %s46_s11, [#allocation6], %s626_s27, %s626_s27, %s627_s28  }
  0x23   :  { %s630_s17 = smov [#allocation8]  }
  0x24   :  { %s59_s18 = sshll.u32 %s630_s17, 4  ;;  %s60_s18 = int_to_ptr.vmem [resolvable:$true] %s59_s18 }
  0x25   :  { %s585_s19 = scalar_lea.vmem %s60_s18, 1024  ;;  %p590_p2 = scmp.lt.s32.totalorder %s60_s18, %s60_s18 }
  0x26   :  { %p586_p1 = scmp.ne.s32.totalorder %s60_s18, %s585_s19  ;;  %p591_p3 = scmp.lt.s32.totalorder %s585_s19, %s585_s19 }
  0x28   :  { %p592_p4 = por %p591_p3, %p590_p2 }
  0x2a   :  { %p593_p5 = pnand %p592_p4, %p586_p1 }
  0x2c   :  { %596 = shalt.err (!%p593_p5)
}
  0x2d   :  { %65 = dma.hbm_to_vmem [thread:$0]  %s732_s5, 1024, %s60_s18, [#allocation9], %s626_s27, %s626_s27, %s627_s28  }
  0x2e   :  { %617 = dma.done.wait [#allocation3], 128  }
  0x2f   :  { %618 = vsyncadd [#allocation3], 4294967168 }
  0x30   :  { %619 = dma.done.wait [#allocation6], 1152  }
  0x31   :  { %620 = vsyncadd [#allocation6], 4294966144 }
  0x32   :  { %621 = dma.done.wait [#allocation9], 1024  }
  0x33   :  { %622 = vsyncadd [#allocation9], 4294966272  ;;  %v631_v0 = vmov 0.0   ;;  %vm632_vm0 = vmmov 0   ;;  %v496_v1 = vld [vmem:[#allocation5] sm:$0xff]   ;;  %v81_v2 = vld [vmem:[#allocation2] sm:$0xff] }
  0x34   :  { %441 = vmatprep.subr.bf16.mxu0 %v631_v0  ;;  %443 = vmatprep.mubr.msk.bf16.mxu0 %vm632_vm0, %v631_v0  ;;  %v82_v3 = vpack.c.bf16 %v81_v2, %v81_v2  ;;  %vm98_vm1 = vcmask 130048   ;;  %v497_v4 = vld [vmem:[#allocation7 + $0x38] sm:$0xff]   ;;  %v498_v5 = vld [vmem:[#allocation7 + $0x30] sm:$0xff]   ;;  %v499_v6 = vld [vmem:[#allocation7 + $0x28] sm:$0xff]   ;;  %vm368_vm2 = vcmask 64512   ;;  %vm381_vm3 = vcmask 60416  }
  0x35   :  { %447 = vmatprep.subr.bf16.mxu1 %v631_v0  ;;  %463 = vmatprep.mubr.msk.bf16.mxu1 %vm632_vm0, %v631_v0  ;;  %v500_v7 = vld [vmem:[#allocation7 + $0x20] sm:$0xff]   ;;  %v501_v8 = vld [vmem:[#allocation7 + $0x18] sm:$0xff]   ;;  %v502_v9 = vld [vmem:[#allocation7 + $0x10] sm:$0xff]  }
  0x36   :  { %442 = vmatpush3.bf16.msra.mxu0 %v496_v1  ;;  %448 = vmatpush3.bf16.msra.mxu1 %v497_v4  ;;  %v503_v10 = vld [vmem:[#allocation7 + $0x8] sm:$0xff]   ;;  %v504_v11 = vld [vmem:[#allocation7] sm:$0xff]   ;;  %v505_v12 = vld [vmem:[#allocation8 + $0x38] sm:$0xff]  }
  0x37   :  { %467 = vmatprep.subr.bf16.mxu0 %v631_v0  ;;  %449 = vmatprep.subr.bf16.mxu1 %v631_v0  ;;  %v506_v13 = vld [vmem:[#allocation8 + $0x30] sm:$0xff]   ;;  %v507_v14 = vld [vmem:[#allocation8 + $0x28] sm:$0xff]   ;;  %v508_v15 = vld [vmem:[#allocation8 + $0x20] sm:$0xff]  }
  0x38   :  { %v509_v16 = vld [vmem:[#allocation8 + $0x18] sm:$0xff]   ;;  %v510_v17 = vld [vmem:[#allocation8 + $0x10] sm:$0xff]   ;;  %v511_v26 = vld [vmem:[#allocation8 + $0x8] sm:$0xff]  }
  0x39   :  { %444 = vmatmul.mubr.msk.bf16.vlgmr.msra.gmra.mxu0 %vm98_vm1, %v82_v3  ;;  %v400_v18 = vld [vmem:[%s729_s2] ss:$0 sm:$0xff]  ;;  %v512_v27 = vld [vmem:[#allocation8] sm:$0xff]  }
  0x3a   :  { %483 = vmatprep.mubr.msk.bf16.mxu0 %vm632_vm0, %v631_v0  ;;  %450 = vmatpush3.bf16.msra.mxu1 %v498_v5  ;;  %v403_v28 = vld [vmem:[%s731_s4] ss:$0 sm:$0xff]  ;;  %s633_s4 = smov [#allocation10]  }
  0x3b   :  { %451 = vmatprep.subr.bf16.mxu1 %v631_v0  ;;  %468 = vmatpush3.bf16.msra.mxu0 %v505_v12  ;;  %v412_v36 = vld [vmem:[%s733_s6] ss:$0 sm:$0xff]  ;;  %s389_s6 = sshll.u32 %s633_s4, 4  ;;  %s390_s6 = int_to_ptr.vmem [resolvable:$true] %s389_s6 }
  0x3c   :  { %469 = vmatprep.subr.bf16.mxu0 %v631_v0  ;;  %s597_s24 = scalar_lea.vmem %s390_s6, 64  ;;  %p602_p7 = scmp.lt.s32.totalorder %s390_s6, %s390_s6 }
  0x3d   :  { %p598_p6 = scmp.ne.s32.totalorder %s390_s6, %s597_s24  ;;  %p603_p8 = scmp.lt.s32.totalorder %s597_s24, %s597_s24 }
  0x3e   :  { %452 = vmatpush3.bf16.msra.mxu1 %v499_v6 }
  0x3f   :  { %453 = vmatprep.subr.bf16.mxu1 %v631_v0  ;;  %470 = vmatpush3.bf16.msra.mxu0 %v506_v13  ;;  %p604_p9 = por %p603_p8, %p602_p7 }
  0x40   :  { %471 = vmatprep.subr.bf16.mxu0 %v631_v0 }
  0x41   :  { %p605_p10 = pnand %p604_p9, %p598_p6 }
  0x42   :  { %454 = vmatpush3.bf16.msra.mxu1 %v500_v7 }
  0x43   :  { %455 = vmatprep.subr.bf16.mxu1 %v631_v0  ;;  %472 = vmatpush3.bf16.msra.mxu0 %v507_v14 }
  0x44   :  { %473 = vmatprep.subr.bf16.mxu0 %v631_v0 }
  0x46   :  { %456 = vmatpush3.bf16.msra.mxu1 %v501_v8 }
  0x47   :  { %457 = vmatprep.subr.bf16.mxu1 %v631_v0  ;;  %474 = vmatpush3.bf16.msra.mxu0 %v508_v15 }
  0x48   :  { %475 = vmatprep.subr.bf16.mxu0 %v631_v0 }
  0x4a   :  { %458 = vmatpush3.bf16.msra.mxu1 %v502_v9 }
  0x4b   :  { %459 = vmatprep.subr.bf16.mxu1 %v631_v0  ;;  %476 = vmatpush3.bf16.msra.mxu0 %v509_v16 }
  0x4c   :  { %477 = vmatprep.subr.bf16.mxu0 %v631_v0 }
  0x4e   :  { %460 = vmatpush3.bf16.msra.mxu1 %v503_v10 }
  0x4f   :  { %461 = vmatprep.subr.bf16.mxu1 %v631_v0  ;;  %478 = vmatpush3.bf16.msra.mxu0 %v510_v17 }
  0x50   :  { %479 = vmatprep.subr.bf16.mxu0 %v631_v0 }
  0x52   :  { %462 = vmatpush3.bf16.msra.mxu1 %v504_v11 }
  0x53   :  { %480 = vmatpush3.bf16.msra.mxu0 %v511_v26 }
  0x54   :  { %481 = vmatprep.subr.bf16.mxu0 %v631_v0 }
  0x57   :  { %482 = vmatpush3.bf16.msra.mxu0 %v512_v27 }
  0xf9   :  { %v136_v19 = vpop.f32.mrf.mxu0 }
  0xfa   :  { %v137_v20 = vadd.f32 %v400_v18, %v136_v19 }
  0xfb   :  { %v445_v21 = vpop.f32.mrf.mxu0 }
  0xfc   :  { %v142_v22 = vmax.f32 %v137_v20, 0.0 }
  0xfd   :  { %v139_v23 = vpop.f32.mrf.mxu0 }
  0xfe   :  { %v143_v24 = vpack.c.bf16 %v142_v22, %v142_v22 }
  0xff   :  { %v446_v25 = vpop.f32.mrf.mxu0 }
 0x100   :  { %464 = vmatmul.mubr.bf16.vlgmr.msra.gmra.mxu1 %v143_v24 }
 0x1c0   :  { %v249_v29 = vpop.f32.mrf.mxu1 }
 0x1c1   :  { %v250_v30 = vadd.f32 %v403_v28, %v249_v29 }
 0x1c2   :  { %v465_v31 = vpop.f32.mrf.mxu1 }
 0x1c3   :  { %v255_v32 = vmax.f32 %v250_v30, 0.0 }
 0x1c4   :  { %v252_v33 = vpop.f32.mrf.mxu1 }
 0x1c5   :  { %v256_v34 = vpack.c.bf16 %v255_v32, %v255_v32 }
 0x1c6   :  { %v466_v35 = vpop.f32.mrf.mxu1 }
 0x1c7   :  { %484 = vmatmul.mubr.bf16.vlgmr.msra.gmra.mxu0 %v256_v34 }
 0x287   :  { %v362_v37 = vpop.f32.mrf.mxu0 }
 0x288   :  { %v363_v38 = vadd.f32 %v412_v36, %v362_v37 }
 0x289   :  { %v485_v39 = vpop.f32.mrf.mxu0 }
 0x28a   :  { %v369_v40 = vsel %vm368_vm2, %v363_v38, -inf }
 0x28b   :  { %370 = vmax.xlane.f32.xlu0 %v369_v40  ;;  %v365_v41 = vpop.f32.mrf.mxu0 }
 0x28d   :  { %v486_v42 = vpop.f32.mrf.mxu0 }
 0x314   :  { %v371_v43 = vpop.xlane.xlu0 %370 }
 0x315   :  { %v372_v44 = vsub.f32 %v363_v38, %v371_v43 }
 0x317   :  { %v373_v45 = vmul.f32 1.442695, %v372_v44 }
 0x319   :  { %513 = vpow2.f32 %v373_v45 }
 0x326   :  { %v514_v46 = vpop.eup %513 }
 0x327   :  { %v375_v47 = vsel %vm368_vm2, %v514_v46, 0.0 }
 0x328   :  { %376 = vadd.xlane.f32.xlu0 %v375_v47 }
 0x3b1   :  { %v377_v48 = vpop.xlane.xlu0 %376 }
 0x3b2   :  { %515 = vrcp.f32 %v377_v48 }
 0x3bf   :  { %v516_v49 = vpop.eup %515 }
 0x3c0   :  { %v379_v50 = vmul.f32 %v516_v49, %v514_v46 }
 0x3c2   :  { %v380_v51 = vpack.c.bf16 %v379_v50, %v379_v50 }
 0x3c4   :  { %382 = vst.msk [vmem:[#allocation10] sm:$0xf] %vm381_vm3, %v380_v51 }
 0x3c5   :  { %608 = shalt.err (!%p605_p10)
}
 0x3c6   :  { %392 = dma.vmem_to_hbm [thread:$0]  %s390_s6, 64, %s734_s7, [#allocation4]  }
 0x3c7   :  { %623 = dma.done.wait [#allocation4], 64  }
 0x3c8   :  { %624 = vsyncadd [#allocation4], 4294967232 }
 0x3c9   :  { %396 = vsyncpa [#allocation3], 1 }
 0x3ca   :  { %397 = vsyncpa [#allocation6], 1 }
 0x3cb   :  { %398 = vsyncpa [#allocation9], 1 }
 0x3cc   :  { %399 = vsyncpa [#allocation4], 1 }

</bundles_post_ra>
